<compile_context>
chip_gen: v5e
topology: v5e:2x2
jax: 0.10.0
libtpu: 0.0.40
codegen_flags: <defaults>
</compile_context>

<pallas_src>
import functools

import numpy as np
import jax
import jax.numpy as jnp
from jax.experimental import pallas as pl


# ----------------------------------------------------------------------------- helpers
def _full_spec(shape):
    # whole array as a single block (block dims equal the full array dims; grid=())
    return pl.BlockSpec(shape, lambda: (0,) * len(shape))


def _pad_rows(v, mult):
    """Zero-pad dim 0 of `v` up to a multiple of `mult`."""
    r = int(v.shape[0])
    p = (-r) % mult
    if p:
        v = jnp.pad(v, [(0, p)] + [(0, 0)] * (v.ndim - 1))
    return v


def _act(y, kind):
    if kind == "relu":
        return jnp.maximum(y, 0.0)
    if kind == "sigmoid":
        return jax.nn.sigmoid(y)
    return y


def _bf16(x):
    return x.astype(jnp.bfloat16)


# ----------------------------------------------------------------------------- fused kernel
def _dlrm_fused_kernel(*refs, n_bot, bot_acts, emb_meta, pairs,
                       n_top_rest, top_modes, top_acts):
    it = iter(refs)
    x_ref, meta_ref, tbls_ref = next(it), next(it), next(it)
    bot = [(next(it), next(it)) for _ in range(n_bot)]
    wt0x_ref, wt0z_ref, bt0_ref = next(it), next(it), next(it)
    top_rest = [(next(it), next(it)) for _ in range(n_top_rest)]
    o_ref = next(it)

    B = x_ref.shape[0]

    # Hoisted/cached iotas: JAX does not CSE broadcast_in_dim, so without this each
    # embedding table would re-emit the same (B, L) iota (and equal-shaped col iotas).
    _iotas = {}

    def iota(shape, dim):
        key = (shape, dim)
        if key not in _iotas:
            _iotas[key] = jax.lax.broadcasted_iota(jnp.int32, shape, dim)
        return _iotas[key]

    def mask01_bf16(cond):
        # bool -> f32 -> bf16 keeps the i1 conversion on the well-supported path
        # (v5e VPU has no bf16 arithmetic); 0/1 values are exact in bf16.
        return cond.astype(jnp.float32).astype(jnp.bfloat16)

    # ---- bottom MLP: bf16 MXU operands, f32 accumulation, f32 epilogue ---------------
    x = x_ref[...]
    for i, (w_ref, b_ref) in enumerate(bot):
        x = jnp.dot(_bf16(x), w_ref[...],
                    preferred_element_type=jnp.float32) + b_ref[...]
        x = _act(x, bot_acts[i])

    # ---- EmbeddingBag(mode='sum') for every table, all in one launch -----------------
    #   rows   = onehot @ table : (L,n)@(n,m)   exact bf16 row gather
    #   pooled = seg    @ rows  : (B,L)@(L,m)   exact f32 sums of bf16 rows
    # (skips the previous (B,n) counts intermediate and its B*L*n MXU term)
    feats = [x]
    for (idx_off, L, start_off, end_off, tbl_off, n) in emb_meta:
        idx = meta_ref[pl.ds(idx_off, L), :]          # (L,1) int32
        start = meta_ref[pl.ds(start_off, B), :]      # (B,1) int32
        end = meta_ref[pl.ds(end_off, B), :]          # (B,1) int32
        tbl = tbls_ref[pl.ds(tbl_off, n), :]          # (n,m) bf16

        jj = iota((B, L), 1)
        seg = mask01_bf16((jj >= start) & (jj < end))                       # (B,L)
        col = iota((L, n), 1)
        onehot = mask01_bf16(col == idx)                                     # (L,n)
        rows = jnp.dot(onehot, tbl, preferred_element_type=jnp.float32)      # (L,m)
        feats.append(jnp.dot(seg, _bf16(rows),
                             preferred_element_type=jnp.float32))            # (B,m)

    # ---- 'dot' interaction fused into top-MLP layer 0 ---------------------------------
    # [x | Zflat] @ W0^T + b0 == x @ W0x + b0 + sum_p Zflat[:, p] * W0z[p, :]
    y = jnp.dot(_bf16(x), wt0x_ref[...],
                preferred_element_type=jnp.float32) + bt0_ref[...]
    for p, (fi, fj) in enumerate(pairs):
        zij = jnp.sum(feats[fi] * feats[fj], axis=-1, keepdims=True)   # (B,1) VPU+XLU
        # single-row ref slice: only one W0z row live per pair (no full-W0z value)
        y = y + zij * wt0z_ref[pl.ds(p, 1), :]                          # rank-1 VPU update
    y = _act(y, top_acts[0])

    # ---- remaining top-MLP layers ------------------------------------------------------
    for k, (w_ref, b_ref) in enumerate(top_rest):
        if top_modes[k] == "reduce":          # (n -> 1): VPU multiply + lane reduce (f32)
            y = jnp.sum(y * w_ref[...], axis=-1, keepdims=True) + b_ref[...]
        else:                                 # bf16 MXU, f32 accumulate
            y = jnp.dot(_bf16(y), w_ref[...],
                        preferred_element_type=jnp.float32) + b_ref[...]
        y = _act(y, top_acts[k + 1])

    o_ref[...] = y.astype(o_ref.dtype)


# ----------------------------------------------------------------------------- wrapper
def dlrm_forward(dense_x, lS_o, lS_i, bot_params, top_params, emb_tables,
                 arch_interaction_itself=False, loss_threshold=0.0):
    dense_x = jnp.asarray(dense_x, jnp.float32)
    B = int(dense_x.shape[0])
    d = int(bot_params[-1][0].shape[1])          # bottom-MLP output dim == emb dim
    m = int(emb_tables[0].shape[1])
    assert m == d and all(int(t.shape[1]) == m for t in emb_tables)

    nf = 1 + len(emb_tables)
    koff = 0 if arch_interaction_itself else -1
    li, lj = np.tril_indices(nf, k=koff, m=nf)
    pairs = tuple(zip(li.tolist(), lj.tolist()))
    npairs = len(pairs)

    # ---- pack all per-table int32 metadata into ONE lane-1 operand, and all embedding
    #      tables into ONE row-concatenated bf16 operand (fewer, fatter operands =>
    #      fewer DMA descriptors / lower fixed per-launch cost). Segments are padded so
    #      every in-kernel static slice starts on a sublane / bf16-tile boundary.
    meta_cols, tbl_blocks, emb_meta = [], [], []
    mcur = tcur = 0
    for tbl, idx, offs in zip(emb_tables, lS_i, lS_o):
        idx = jnp.asarray(idx, jnp.int32).reshape(-1, 1)
        offs = jnp.asarray(offs, jnp.int32).reshape(-1, 1)
        L, n = int(idx.shape[0]), int(tbl.shape[0])
        ends = jnp.concatenate([offs[1:], jnp.full((1, 1), L, jnp.int32)], axis=0)

        idx_pad, offs_pad, ends_pad = (_pad_rows(v, 8) for v in (idx, offs, ends))
        idx_off = mcur;   mcur += int(idx_pad.shape[0])
        start_off = mcur; mcur += int(offs_pad.shape[0])
        end_off = mcur;   mcur += int(ends_pad.shape[0])
        meta_cols += [idx_pad, offs_pad, ends_pad]

        tbl_pad = _pad_rows(jnp.asarray(tbl, jnp.float32), 16)   # 16 = bf16 sublane tile
        tbl_off = tcur;   tcur += int(tbl_pad.shape[0])
        tbl_blocks.append(tbl_pad.astype(jnp.bfloat16))

        emb_meta.append((idx_off, L, start_off, end_off, tbl_off, n))

    meta = jnp.concatenate(meta_cols, axis=0)     # (sum_pad, 1) int32
    tbls = jnp.concatenate(tbl_blocks, axis=0)    # (sum_pad_rows, m) bf16

    inputs = [dense_x, meta, tbls]

    bot_acts = tuple(a for (_, _, a) in bot_params)
    for w_t, b, _ in bot_params:
        inputs.append(jnp.asarray(w_t, jnp.float32).astype(jnp.bfloat16))   # (n,m) pre-T
        inputs.append(jnp.asarray(b, jnp.float32).reshape(1, -1))

    # top layer 0: split rows acting on x (MXU, bf16) vs. on interaction feats (VPU, f32)
    w0_t, b0, act0 = top_params[0]
    w0_t = jnp.asarray(w0_t, jnp.float32)
    assert int(w0_t.shape[0]) == d + npairs
    inputs.append(w0_t[:d, :].astype(jnp.bfloat16))
    inputs.append(w0_t[d:, :])                                   # f32: used on the VPU
    inputs.append(jnp.asarray(b0, jnp.float32).reshape(1, -1))

    top_modes, top_acts = [], [act0]
    for w_t, b, act in top_params[1:]:
        w_t = jnp.asarray(w_t, jnp.float32)
        if int(w_t.shape[1]) == 1:
            inputs.append(jnp.transpose(w_t))                    # (1,n) f32 for VPU reduce
            top_modes.append("reduce")
        else:
            inputs.append(w_t.astype(jnp.bfloat16))
            top_modes.append("dot")
        inputs.append(jnp.asarray(b, jnp.float32).reshape(1, -1))
        top_acts.append(act)

    out_dim = int(top_params[-1][0].shape[1])

    kernel = functools.partial(
        _dlrm_fused_kernel,
        n_bot=len(bot_params), bot_acts=bot_acts,
        emb_meta=tuple(emb_meta), pairs=pairs,
        n_top_rest=len(top_params) - 1,
        top_modes=tuple(top_modes), top_acts=tuple(top_acts))

    p = pl.pallas_call(
        kernel,
        out_shape=jax.ShapeDtypeStruct((B, out_dim), jnp.float32),
        in_specs=[_full_spec(tuple(a.shape)) for a in inputs],
        out_specs=_full_spec((B, out_dim)),
    )(*inputs)

    if 0.0 < loss_threshold < 1.0:
        p = jnp.clip(p, loss_threshold, 1.0 - loss_threshold)
    return p


# ----------------------------------------------------------------------------- parameters
_rng = np.random.RandomState(0)  # deterministic synthetic init (mirrors create_mlp/create_emb)


def create_mlp_params(ln, sigmoid_layer):
    layers = []
    for i in range(len(ln) - 1):
        n, mm = int(ln[i]), int(ln[i + 1])
        W = _rng.normal(0.0, np.sqrt(2.0 / (mm + n)), size=(mm, n)).astype(np.float32)
        b = _rng.normal(0.0, np.sqrt(1.0 / mm), size=(mm,)).astype(np.float32)
        act = "sigmoid" if i == sigmoid_layer else "relu"
        layers.append((jnp.asarray(W.T), jnp.asarray(b), act))  # pre-transpose weight
    return layers


def create_emb_params(m, ln_emb):
    tables = []
    for n in ln_emb:
        n = int(n)
        W = _rng.uniform(-np.sqrt(1.0 / n), np.sqrt(1.0 / n), size=(n, m)).astype(np.float32)
        tables.append(jnp.asarray(W))
    return tables


# ----------------------------------------------------------------------------- reference
def dlrm_reference(dense_x, lS_o, lS_i, bot_params, top_params, emb_tables,
                   arch_interaction_itself=False):
    """Pure-JAX f32 reference mirroring the PyTorch sequential_forward."""
    def mlp(x, params):
        for w_t, b, act in params:
            x = x @ w_t + b
            x = jax.nn.sigmoid(x) if act == "sigmoid" else jnp.maximum(x, 0.0)
        return x

    x = mlp(dense_x, bot_params)
    ly = []
    for tbl, idx, off in zip(emb_tables, lS_i, lS_o):
        L = idx.shape[0]
        ends = jnp.concatenate([off[1:], jnp.array([L], jnp.int32)])
        rows = tbl[idx]
        j = jnp.arange(L)[None, :]
        seg = ((j >= off[:, None]) & (j < ends[:, None])).astype(jnp.float32)
        ly.append(seg @ rows)
    T = jnp.stack([x] + ly, axis=1)
    Z = jnp.einsum("bnd,bmd->bnm", T, T)
    nf = T.shape[1]
    li, lj = np.tril_indices(nf, k=0 if arch_interaction_itself else -1, m=nf)
    R = jnp.concatenate([x, Z[:, li, lj]], axis=1)
    return mlp(R, top_params)


# ----------------------------------------------------------------------------- main
if __name__ == "__main__":
    batch = 8
    m_spa = 16                              # embedding dim == bottom-MLP output dim
    ln_emb = np.array([20, 30, 40])         # 3 embedding tables
    ln_bot = np.array([13, 32, m_spa])
    nf = 1 + ln_emb.size
    npairs = nf * (nf - 1) // 2             # strict lower triangle (itself=False)
    ln_top = np.array([m_spa + npairs, 32, 1])
    sigmoid_bot = -1                        # all ReLU in bottom MLP
    sigmoid_top = ln_top.size - 2           # sigmoid on last top layer

    bot_params = create_mlp_params(ln_bot, sigmoid_bot)
    top_params = create_mlp_params(ln_top, sigmoid_top)
    emb_tables = create_emb_params(m_spa, ln_emb)

    key = jax.random.PRNGKey(0)
    k_dense, k_sparse = jax.random.split(key)
    dense_x = jax.random.normal(k_dense, (batch, int(ln_bot[0])), jnp.float32)

    pooling = 4                             # indices per sample per table
    lS_i, lS_o = [], []
    for t, n in enumerate(ln_emb):
        kt = jax.random.fold_in(k_sparse, t)
        lS_i.append(jax.random.randint(kt, (batch * pooling,), 0, int(n), jnp.int32))
        lS_o.append(jnp.arange(batch, dtype=jnp.int32) * pooling)

    out = dlrm_forward(dense_x, lS_o, lS_i, bot_params, top_params, emb_tables)
    out = jax.block_until_ready(out)

    ref = dlrm_reference(dense_x, lS_o, lS_i, bot_params, top_params, emb_tables)
    assert out.shape == (batch, 1)
    # bf16-operand MXU path (f32 accumulation) vs. pure-f32 reference: bf16-class tolerance.
    np.testing.assert_allclose(np.asarray(out), np.asarray(ref), rtol=2e-2, atol=2e-2)

    print("KERNEL_OK")
</pallas_src>

<mosaic_0001>
module attributes {stable_mosaic.version = 11 : i64} {
  func.func @_dlrm_fused_kernel(%arg0: memref<8x13xf32, #tpu.memory_space<vmem>>, %arg1: memref<144x1xi32, #tpu.memory_space<vmem>>, %arg2: memref<112x16xbf16, #tpu.memory_space<vmem>>, %arg3: memref<13x32xbf16, #tpu.memory_space<vmem>>, %arg4: memref<1x32xf32, #tpu.memory_space<vmem>>, %arg5: memref<32x16xbf16, #tpu.memory_space<vmem>>, %arg6: memref<1x16xf32, #tpu.memory_space<vmem>>, %arg7: memref<16x32xbf16, #tpu.memory_space<vmem>>, %arg8: memref<6x32xf32, #tpu.memory_space<vmem>>, %arg9: memref<1x32xf32, #tpu.memory_space<vmem>>, %arg10: memref<1x32xf32, #tpu.memory_space<vmem>>, %arg11: memref<1x1xf32, #tpu.memory_space<vmem>>, %arg12: memref<8x1xf32, #tpu.memory_space<vmem>>) attributes {dimension_semantics = [], scalar_prefetch = 0 : i64, scratch_operands = 0 : i64, tpu.core_type = #tpu.core_type<tc>} {
    %c0 = arith.constant 0 : index
    %c0_0 = arith.constant 0 : index
    %0 = vector.load %arg0[%c0, %c0_0] : memref<8x13xf32, #tpu.memory_space<vmem>>, vector<8x13xf32>
    %1 = arith.truncf %0 : vector<8x13xf32> to vector<8x13xbf16>
    %c0_1 = arith.constant 0 : index
    %c0_2 = arith.constant 0 : index
    %2 = vector.load %arg3[%c0_1, %c0_2] : memref<13x32xbf16, #tpu.memory_space<vmem>>, vector<13x32xbf16>
    %cst = arith.constant dense<0.000000e+00> : vector<8x32xf32>
    %3 = tpu.matmul %1, %2, %cst {dimension_numbers = #tpu.dot_dimension_numbers<[1], [0], [0], [1], [0, 0, 1, 1], [], []>} : vector<8x13xbf16>, vector<13x32xbf16>, vector<8x32xf32> -> vector<8x32xf32>
    %c0_3 = arith.constant 0 : index
    %c0_4 = arith.constant 0 : index
    %4 = vector.load %arg4[%c0_3, %c0_4] : memref<1x32xf32, #tpu.memory_space<vmem>>, vector<1x32xf32>
    %5 = vector.broadcast %4 : vector<1x32xf32> to vector<8x32xf32>
    %6 = arith.addf %3, %5 : vector<8x32xf32>
    %cst_5 = arith.constant 0.000000e+00 : f32
    %7 = vector.broadcast %cst_5 : f32 to vector<8x32xf32>
    %8 = arith.maximumf %6, %7 : vector<8x32xf32>
    %9 = arith.truncf %8 : vector<8x32xf32> to vector<8x32xbf16>
    %c0_6 = arith.constant 0 : index
    %c0_7 = arith.constant 0 : index
    %10 = vector.load %arg5[%c0_6, %c0_7] : memref<32x16xbf16, #tpu.memory_space<vmem>>, vector<32x16xbf16>
    %cst_8 = arith.constant dense<0.000000e+00> : vector<8x16xf32>
    %11 = tpu.matmul %9, %10, %cst_8 {dimension_numbers = #tpu.dot_dimension_numbers<[1], [0], [0], [1], [0, 0, 1, 1], [], []>} : vector<8x32xbf16>, vector<32x16xbf16>, vector<8x16xf32> -> vector<8x16xf32>
    %c0_9 = arith.constant 0 : index
    %c0_10 = arith.constant 0 : index
    %12 = vector.load %arg6[%c0_9, %c0_10] : memref<1x16xf32, #tpu.memory_space<vmem>>, vector<1x16xf32>
    %13 = vector.broadcast %12 : vector<1x16xf32> to vector<8x16xf32>
    %14 = arith.addf %11, %13 : vector<8x16xf32>
    %cst_11 = arith.constant 0.000000e+00 : f32
    %15 = vector.broadcast %cst_11 : f32 to vector<8x16xf32>
    %16 = arith.maximumf %14, %15 : vector<8x16xf32>
    %c0_12 = arith.constant 0 : index
    %c0_13 = arith.constant 0 : index
    %17 = vector.load %arg1[%c0_12, %c0_13] : memref<144x1xi32, #tpu.memory_space<vmem>>, vector<32x1xi32>
    %c32 = arith.constant 32 : index
    %c0_14 = arith.constant 0 : index
    %18 = vector.load %arg1[%c32, %c0_14] : memref<144x1xi32, #tpu.memory_space<vmem>>, vector<8x1xi32>
    %c40 = arith.constant 40 : index
    %c0_15 = arith.constant 0 : index
    %19 = vector.load %arg1[%c40, %c0_15] : memref<144x1xi32, #tpu.memory_space<vmem>>, vector<8x1xi32>
    %c0_16 = arith.constant 0 : index
    %c0_17 = arith.constant 0 : index
    %20 = vector.load %arg2[%c0_16, %c0_17] : memref<112x16xbf16, #tpu.memory_space<vmem>>, vector<20x16xbf16>
    %21 = tpu.iota {dimensions = array<i32: 1>} : vector<8x32xi32>
    %22 = vector.broadcast %18 : vector<8x1xi32> to vector<8x32xi32>
    %23 = arith.cmpi sge, %21, %22 : vector<8x32xi32>
    %24 = vector.broadcast %19 : vector<8x1xi32> to vector<8x32xi32>
    %25 = arith.cmpi slt, %21, %24 : vector<8x32xi32>
    %26 = arith.andi %23, %25 : vector<8x32xi1>
    %27 = arith.extui %26 : vector<8x32xi1> to vector<8x32xi32>
    %28 = arith.sitofp %27 : vector<8x32xi32> to vector<8x32xf32>
    %29 = arith.truncf %28 : vector<8x32xf32> to vector<8x32xbf16>
    %30 = tpu.iota {dimensions = array<i32: 1>} : vector<32x20xi32>
    %31 = vector.broadcast %17 : vector<32x1xi32> to vector<32x20xi32>
    %32 = arith.cmpi eq, %30, %31 : vector<32x20xi32>
    %33 = arith.extui %32 : vector<32x20xi1> to vector<32x20xi32>
    %34 = arith.sitofp %33 : vector<32x20xi32> to vector<32x20xf32>
    %35 = arith.truncf %34 : vector<32x20xf32> to vector<32x20xbf16>
    %cst_18 = arith.constant dense<0.000000e+00> : vector<32x16xf32>
    %36 = tpu.matmul %35, %20, %cst_18 {dimension_numbers = #tpu.dot_dimension_numbers<[1], [0], [0], [1], [0, 0, 1, 1], [], []>} : vector<32x20xbf16>, vector<20x16xbf16>, vector<32x16xf32> -> vector<32x16xf32>
    %37 = arith.truncf %36 : vector<32x16xf32> to vector<32x16xbf16>
    %cst_19 = arith.constant dense<0.000000e+00> : vector<8x16xf32>
    %38 = tpu.matmul %29, %37, %cst_19 {dimension_numbers = #tpu.dot_dimension_numbers<[1], [0], [0], [1], [0, 0, 1, 1], [], []>} : vector<8x32xbf16>, vector<32x16xbf16>, vector<8x16xf32> -> vector<8x16xf32>
    %c48 = arith.constant 48 : index
    %c0_20 = arith.constant 0 : index
    %39 = vector.load %arg1[%c48, %c0_20] : memref<144x1xi32, #tpu.memory_space<vmem>>, vector<32x1xi32>
    %c80 = arith.constant 80 : index
    %c0_21 = arith.constant 0 : index
    %40 = vector.load %arg1[%c80, %c0_21] : memref<144x1xi32, #tpu.memory_space<vmem>>, vector<8x1xi32>
    %c88 = arith.constant 88 : index
    %c0_22 = arith.constant 0 : index
    %41 = vector.load %arg1[%c88, %c0_22] : memref<144x1xi32, #tpu.memory_space<vmem>>, vector<8x1xi32>
    %c32_23 = arith.constant 32 : index
    %c0_24 = arith.constant 0 : index
    %42 = vector.load %arg2[%c32_23, %c0_24] : memref<112x16xbf16, #tpu.memory_space<vmem>>, vector<30x16xbf16>
    %43 = vector.broadcast %40 : vector<8x1xi32> to vector<8x32xi32>
    %44 = arith.cmpi sge, %21, %43 : vector<8x32xi32>
    %45 = vector.broadcast %41 : vector<8x1xi32> to vector<8x32xi32>
    %46 = arith.cmpi slt, %21, %45 : vector<8x32xi32>
    %47 = arith.andi %44, %46 : vector<8x32xi1>
    %48 = arith.extui %47 : vector<8x32xi1> to vector<8x32xi32>
    %49 = arith.sitofp %48 : vector<8x32xi32> to vector<8x32xf32>
    %50 = arith.truncf %49 : vector<8x32xf32> to vector<8x32xbf16>
    %51 = tpu.iota {dimensions = array<i32: 1>} : vector<32x30xi32>
    %52 = vector.broadcast %39 : vector<32x1xi32> to vector<32x30xi32>
    %53 = arith.cmpi eq, %51, %52 : vector<32x30xi32>
    %54 = arith.extui %53 : vector<32x30xi1> to vector<32x30xi32>
    %55 = arith.sitofp %54 : vector<32x30xi32> to vector<32x30xf32>
    %56 = arith.truncf %55 : vector<32x30xf32> to vector<32x30xbf16>
    %cst_25 = arith.constant dense<0.000000e+00> : vector<32x16xf32>
    %57 = tpu.matmul %56, %42, %cst_25 {dimension_numbers = #tpu.dot_dimension_numbers<[1], [0], [0], [1], [0, 0, 1, 1], [], []>} : vector<32x30xbf16>, vector<30x16xbf16>, vector<32x16xf32> -> vector<32x16xf32>
    %58 = arith.truncf %57 : vector<32x16xf32> to vector<32x16xbf16>
    %cst_26 = arith.constant dense<0.000000e+00> : vector<8x16xf32>
    %59 = tpu.matmul %50, %58, %cst_26 {dimension_numbers = #tpu.dot_dimension_numbers<[1], [0], [0], [1], [0, 0, 1, 1], [], []>} : vector<8x32xbf16>, vector<32x16xbf16>, vector<8x16xf32> -> vector<8x16xf32>
    %c96 = arith.constant 96 : index
    %c0_27 = arith.constant 0 : index
    %60 = vector.load %arg1[%c96, %c0_27] : memref<144x1xi32, #tpu.memory_space<vmem>>, vector<32x1xi32>
    %c128 = arith.constant 128 : index
    %c0_28 = arith.constant 0 : index
    %61 = vector.load %arg1[%c128, %c0_28] : memref<144x1xi32, #tpu.memory_space<vmem>>, vector<8x1xi32>
    %c136 = arith.constant 136 : index
    %c0_29 = arith.constant 0 : index
    %62 = vector.load %arg1[%c136, %c0_29] : memref<144x1xi32, #tpu.memory_space<vmem>>, vector<8x1xi32>
    %c64 = arith.constant 64 : index
    %c0_30 = arith.constant 0 : index
    %63 = vector.load %arg2[%c64, %c0_30] : memref<112x16xbf16, #tpu.memory_space<vmem>>, vector<40x16xbf16>
    %64 = vector.broadcast %61 : vector<8x1xi32> to vector<8x32xi32>
    %65 = arith.cmpi sge, %21, %64 : vector<8x32xi32>
    %66 = vector.broadcast %62 : vector<8x1xi32> to vector<8x32xi32>
    %67 = arith.cmpi slt, %21, %66 : vector<8x32xi32>
    %68 = arith.andi %65, %67 : vector<8x32xi1>
    %69 = arith.extui %68 : vector<8x32xi1> to vector<8x32xi32>
    %70 = arith.sitofp %69 : vector<8x32xi32> to vector<8x32xf32>
    %71 = arith.truncf %70 : vector<8x32xf32> to vector<8x32xbf16>
    %72 = tpu.iota {dimensions = array<i32: 1>} : vector<32x40xi32>
    %73 = vector.broadcast %60 : vector<32x1xi32> to vector<32x40xi32>
    %74 = arith.cmpi eq, %72, %73 : vector<32x40xi32>
    %75 = arith.extui %74 : vector<32x40xi1> to vector<32x40xi32>
    %76 = arith.sitofp %75 : vector<32x40xi32> to vector<32x40xf32>
    %77 = arith.truncf %76 : vector<32x40xf32> to vector<32x40xbf16>
    %cst_31 = arith.constant dense<0.000000e+00> : vector<32x16xf32>
    %78 = tpu.matmul %77, %63, %cst_31 {dimension_numbers = #tpu.dot_dimension_numbers<[1], [0], [0], [1], [0, 0, 1, 1], [], []>} : vector<32x40xbf16>, vector<40x16xbf16>, vector<32x16xf32> -> vector<32x16xf32>
    %79 = arith.truncf %78 : vector<32x16xf32> to vector<32x16xbf16>
    %cst_32 = arith.constant dense<0.000000e+00> : vector<8x16xf32>
    %80 = tpu.matmul %71, %79, %cst_32 {dimension_numbers = #tpu.dot_dimension_numbers<[1], [0], [0], [1], [0, 0, 1, 1], [], []>} : vector<8x32xbf16>, vector<32x16xbf16>, vector<8x16xf32> -> vector<8x16xf32>
    %81 = arith.truncf %16 : vector<8x16xf32> to vector<8x16xbf16>
    %c0_33 = arith.constant 0 : index
    %c0_34 = arith.constant 0 : index
    %82 = vector.load %arg7[%c0_33, %c0_34] : memref<16x32xbf16, #tpu.memory_space<vmem>>, vector<16x32xbf16>
    %cst_35 = arith.constant dense<0.000000e+00> : vector<8x32xf32>
    %83 = tpu.matmul %81, %82, %cst_35 {dimension_numbers = #tpu.dot_dimension_numbers<[1], [0], [0], [1], [0, 0, 1, 1], [], []>} : vector<8x16xbf16>, vector<16x32xbf16>, vector<8x32xf32> -> vector<8x32xf32>
    %c0_36 = arith.constant 0 : index
    %c0_37 = arith.constant 0 : index
    %84 = vector.load %arg9[%c0_36, %c0_37] : memref<1x32xf32, #tpu.memory_space<vmem>>, vector<1x32xf32>
    %85 = vector.broadcast %84 : vector<1x32xf32> to vector<8x32xf32>
    %86 = arith.addf %83, %85 : vector<8x32xf32>
    %87 = arith.mulf %38, %16 : vector<8x16xf32>
    %cst_38 = arith.constant dense<0.000000e+00> : vector<8xf32>
    %88 = vector.multi_reduction <add>, %87, %cst_38 [1] : vector<8x16xf32> to vector<8xf32>
    %89 = vector.shape_cast %88 : vector<8xf32> to vector<8x1xf32>
    %c0_39 = arith.constant 0 : index
    %c0_40 = arith.constant 0 : index
    %90 = vector.load %arg8[%c0_39, %c0_40] : memref<6x32xf32, #tpu.memory_space<vmem>>, vector<1x32xf32>
    %91 = vector.broadcast %89 : vector<8x1xf32> to vector<8x32xf32>
    %92 = vector.broadcast %90 : vector<1x32xf32> to vector<8x32xf32>
    %93 = arith.mulf %91, %92 : vector<8x32xf32>
    %94 = arith.addf %86, %93 : vector<8x32xf32>
    %95 = arith.mulf %59, %16 : vector<8x16xf32>
    %cst_41 = arith.constant dense<0.000000e+00> : vector<8xf32>
    %96 = vector.multi_reduction <add>, %95, %cst_41 [1] : vector<8x16xf32> to vector<8xf32>
    %97 = vector.shape_cast %96 : vector<8xf32> to vector<8x1xf32>
    %c1 = arith.constant 1 : index
    %c0_42 = arith.constant 0 : index
    %98 = vector.load %arg8[%c1, %c0_42] : memref<6x32xf32, #tpu.memory_space<vmem>>, vector<1x32xf32>
    %99 = vector.broadcast %97 : vector<8x1xf32> to vector<8x32xf32>
    %100 = vector.broadcast %98 : vector<1x32xf32> to vector<8x32xf32>
    %101 = arith.mulf %99, %100 : vector<8x32xf32>
    %102 = arith.addf %94, %101 : vector<8x32xf32>
    %103 = arith.mulf %59, %38 : vector<8x16xf32>
    %cst_43 = arith.constant dense<0.000000e+00> : vector<8xf32>
    %104 = vector.multi_reduction <add>, %103, %cst_43 [1] : vector<8x16xf32> to vector<8xf32>
    %105 = vector.shape_cast %104 : vector<8xf32> to vector<8x1xf32>
    %c2 = arith.constant 2 : index
    %c0_44 = arith.constant 0 : index
    %106 = vector.load %arg8[%c2, %c0_44] : memref<6x32xf32, #tpu.memory_space<vmem>>, vector<1x32xf32>
    %107 = vector.broadcast %105 : vector<8x1xf32> to vector<8x32xf32>
    %108 = vector.broadcast %106 : vector<1x32xf32> to vector<8x32xf32>
    %109 = arith.mulf %107, %108 : vector<8x32xf32>
    %110 = arith.addf %102, %109 : vector<8x32xf32>
    %111 = arith.mulf %80, %16 : vector<8x16xf32>
    %cst_45 = arith.constant dense<0.000000e+00> : vector<8xf32>
    %112 = vector.multi_reduction <add>, %111, %cst_45 [1] : vector<8x16xf32> to vector<8xf32>
    %113 = vector.shape_cast %112 : vector<8xf32> to vector<8x1xf32>
    %c3 = arith.constant 3 : index
    %c0_46 = arith.constant 0 : index
    %114 = vector.load %arg8[%c3, %c0_46] : memref<6x32xf32, #tpu.memory_space<vmem>>, vector<1x32xf32>
    %115 = vector.broadcast %113 : vector<8x1xf32> to vector<8x32xf32>
    %116 = vector.broadcast %114 : vector<1x32xf32> to vector<8x32xf32>
    %117 = arith.mulf %115, %116 : vector<8x32xf32>
    %118 = arith.addf %110, %117 : vector<8x32xf32>
    %119 = arith.mulf %80, %38 : vector<8x16xf32>
    %cst_47 = arith.constant dense<0.000000e+00> : vector<8xf32>
    %120 = vector.multi_reduction <add>, %119, %cst_47 [1] : vector<8x16xf32> to vector<8xf32>
    %121 = vector.shape_cast %120 : vector<8xf32> to vector<8x1xf32>
    %c4 = arith.constant 4 : index
    %c0_48 = arith.constant 0 : index
    %122 = vector.load %arg8[%c4, %c0_48] : memref<6x32xf32, #tpu.memory_space<vmem>>, vector<1x32xf32>
    %123 = vector.broadcast %121 : vector<8x1xf32> to vector<8x32xf32>
    %124 = vector.broadcast %122 : vector<1x32xf32> to vector<8x32xf32>
    %125 = arith.mulf %123, %124 : vector<8x32xf32>
    %126 = arith.addf %118, %125 : vector<8x32xf32>
    %127 = arith.mulf %80, %59 : vector<8x16xf32>
    %cst_49 = arith.constant dense<0.000000e+00> : vector<8xf32>
    %128 = vector.multi_reduction <add>, %127, %cst_49 [1] : vector<8x16xf32> to vector<8xf32>
    %129 = vector.shape_cast %128 : vector<8xf32> to vector<8x1xf32>
    %c5 = arith.constant 5 : index
    %c0_50 = arith.constant 0 : index
    %130 = vector.load %arg8[%c5, %c0_50] : memref<6x32xf32, #tpu.memory_space<vmem>>, vector<1x32xf32>
    %131 = vector.broadcast %129 : vector<8x1xf32> to vector<8x32xf32>
    %132 = vector.broadcast %130 : vector<1x32xf32> to vector<8x32xf32>
    %133 = arith.mulf %131, %132 : vector<8x32xf32>
    %134 = arith.addf %126, %133 : vector<8x32xf32>
    %cst_51 = arith.constant 0.000000e+00 : f32
    %135 = vector.broadcast %cst_51 : f32 to vector<8x32xf32>
    %136 = arith.maximumf %134, %135 : vector<8x32xf32>
    %c0_52 = arith.constant 0 : index
    %c0_53 = arith.constant 0 : index
    %137 = vector.load %arg10[%c0_52, %c0_53] : memref<1x32xf32, #tpu.memory_space<vmem>>, vector<1x32xf32>
    %138 = vector.broadcast %137 : vector<1x32xf32> to vector<8x32xf32>
    %139 = arith.mulf %136, %138 : vector<8x32xf32>
    %cst_54 = arith.constant dense<0.000000e+00> : vector<8xf32>
    %140 = vector.multi_reduction <add>, %139, %cst_54 [1] : vector<8x32xf32> to vector<8xf32>
    %141 = vector.shape_cast %140 : vector<8xf32> to vector<8x1xf32>
    %c0_55 = arith.constant 0 : index
    %c0_56 = arith.constant 0 : index
    %142 = vector.load %arg11[%c0_55, %c0_56] : memref<1x1xf32, #tpu.memory_space<vmem>>, vector<1x1xf32>
    %143 = vector.broadcast %142 : vector<1x1xf32> to vector<8x1xf32>
    %144 = arith.addf %141, %143 : vector<8x1xf32>
    %145 = arith.negf %144 : vector<8x1xf32>
    %146 = math.exp %145 : vector<8x1xf32>
    %cst_57 = arith.constant 1.000000e+00 : f32
    %147 = vector.broadcast %cst_57 : f32 to vector<8x1xf32>
    %148 = arith.addf %147, %146 : vector<8x1xf32>
    %149 = arith.divf %147, %148 : vector<8x1xf32>
    %c0_58 = arith.constant 0 : index
    %c0_59 = arith.constant 0 : index
    %150 = vector.load %arg12[%c0_58, %c0_59] : memref<8x1xf32, #tpu.memory_space<vmem>>, vector<8x1xf32>
    tpu.vector_store %arg12[%c0_58, %c0_59], %149 {strides = array<i32>} : memref<8x1xf32, #tpu.memory_space<vmem>>, vector<8x1xf32>,
    return
  }
}

</mosaic_0001>

<bundles_post_ra>
// kernel: tpu_custom_call.1
= control target key start
LH: loop header
LB: loop body
LE: loop exit
PB: predicated region body
PF: predicated region fallthrough
CT: control target
= control target key end

     0   :  { %v656_v0 = vmov 0   ;;  %vm61_vm0 = vcmask 1045504   ;;  %vm62_vm1 = vcmask 1046528   ;;  %v657_v22 = vmov 65535   ;;  %s914_s1 = inlined_call_operand.vmem [shape: s32[144,1], index: 1, kind: input, shape index: {}]   ;;  %s915_s4 = inlined_call_operand.vmem [shape: f32[1,32], index: 4, kind: input, shape index: {}]   ;;  %s916_s3 = inlined_call_operand.vmem [shape: bf16[13,32], index: 3, kind: input, shape index: {}]   ;;  %s917_s2 = inlined_call_operand.vmem [shape: bf16[112,16], index: 2, kind: input, shape index: {}]   ;;  %s918_s0 = inlined_call_operand.vmem [shape: f32[8,13], index: 0, kind: input, shape index: {}]   ;;  %s919_s6 = inlined_call_operand.vmem [shape: f32[1,16], index: 6, kind: input, shape index: {}]   ;;  %s920_s5 = inlined_call_operand.vmem [shape: bf16[32,16], index: 5, kind: input, shape index: {}]   ;;  %s921_s7 = inlined_call_operand.vmem [shape: bf16[16,32], index: 7, kind: input, shape index: {}]   ;;  %s922_s8 = inlined_call_operand.vmem [shape: f32[6,32], index: 8, kind: input, shape index: {}]   ;;  %s923_s9 = inlined_call_operand.vmem [shape: f32[1,32], index: 9, kind: input, shape index: {}]   ;;  %s924_s10 = inlined_call_operand.vmem [shape: f32[1,32], index: 10, kind: input, shape index: {}]   ;;  %s925_s11 = inlined_call_operand.<no memory space> [shape: f32[1,1], index: 11, kind: input, shape index: {}]   ;;  %s926_s12 = inlined_call_operand.vmem [shape: f32[8,1], index: 12, kind: output, shape index: {}]  }
   0x1   :  { %639 = vset.pattern.permute.xlu1 %v656_v0  ;;  %638 = vset.pattern.permute.xlu0 %v656_v0  ;;  %v123_v1 = vld [vmem:[%s914_s1 + $0x10] sm:$0xff]  ;;  %v121_v2 = vld [vmem:[%s914_s1] sm:$0xff]  ;;  %v124_v4 = vld [vmem:[%s914_s1 + $0x18] sm:$0xff]  ;;  %v63_v23 = vsel %vm61_vm0, 4294967295, %v657_v22  ;;  %vm57_vm2 = vcmask 105472   ;;  %vm186_vm3 = vcmask 1041408   ;;  %v130_v31 = vlaneseq }
   0x2   :  { %151 = vperm.xlu1 %639, %v123_v1   ;;  %145 = vperm.xlu0 %638, %v121_v2   ;;  %v125_v3 = vld [vmem:[%s914_s1 + $0x20] sm:$0xff]  ;;  %v122_v5 = vld [vmem:[%s914_s1 + $0x8] sm:$0xff]  ;;  %v228_v7 = vld [vmem:[%s914_s1 + $0x38] sm:$0xff]  ;;  %v64_v24 = vsel %vm62_vm1, %v63_v23, 0  ;;  %v658_v42 = vmov 0.0   ;;  %vm179_vm10 = vcmask 162816  }
   0x3   :  { %640 = vset.pattern.permute.xlu2 %v656_v0  ;;  %v126_v6 = vld [vmem:[%s914_s1 + $0x28] sm:$0xff]  ;;  %v227_v8 = vld [vmem:[%s914_s1 + $0x30] sm:$0xff]  ;;  %v333_v9 = vld [vmem:[%s914_s1 + $0x60] sm:$0xff]  ;;  %v794_v34 = vand.u32 127, %v130_v31  ;;  %vm286_vm13 = vcmask 244736  }
   0x4   :  { %133 = vperm.xlu2 %640, %v125_v3   ;;  %v229_v10 = vld [vmem:[%s914_s1 + $0x40] sm:$0xff]  ;;  %v334_v11 = vld [vmem:[%s914_s1 + $0x68] sm:$0xff]  ;;  %v336_v13 = vld [vmem:[%s914_s1 + $0x78] sm:$0xff] }
   0x5   :  { %v230_v12 = vld [vmem:[%s914_s1 + $0x48] sm:$0xff]  ;;  %v335_v14 = vld [vmem:[%s914_s1 + $0x70] sm:$0xff]  ;;  %v337_v16 = vld [vmem:[%s914_s1 + $0x80] sm:$0xff] }
   0x6   :  { %v231_v15 = vld [vmem:[%s914_s1 + $0x50] sm:$0xff]  ;;  %v232_v17 = vld [vmem:[%s914_s1 + $0x58] sm:$0xff]  ;;  %v338_v18 = vld [vmem:[%s914_s1 + $0x88] sm:$0xff] }
   0x7   :  { %v564_v19 = vld [vmem:[%s916_s3] sm:$0xf]  ;;  %v626_v20 = vld [vmem:[%s916_s3] sm:$0x70]  ;;  %v129_v26 = vld [vmem:[%s917_s2 + $0x8] sm:$0x3] }
   0x8   :  { %v565_v21 = vor.u32 %v626_v20, %v564_v19  ;;  %v175_v27 = vunpack.c.l.b16 %v129_v26  ;;  %v44_v28 = vld [vmem:[%s918_s0] sm:$0xff]  ;;  %v599_v36 = vld [vmem:[%s917_s2 + $0x18] sm:$0xf]  ;;  %v631_v37 = vld [vmem:[%s917_s2 + $0x18] sm:$0x70] }
   0x9   :  { %v45_v29 = vpack.c.bf16 %v44_v28, %v44_v28  ;;  %v629_v33 = vld [vmem:[%s917_s2] sm:$0xff]  ;;  %v600_v38 = vor.u32 %v631_v37, %v599_v36  ;;  %v630_v40 = vld [vmem:[%s917_s2 + $0x10] sm:$0xff]  ;;  %v628_v20 = vld [vmem:[%s920_s5 + $0x8] sm:$0xff] }
   0xa   :  { %154 = vperm.xlu1 %639, %v124_v4   ;;  %148 = vperm.xlu0 %638, %v122_v5   ;;  %v66_v25 = vand.u32 %v565_v21, %v64_v24  ;;  %v177_v30 = vpack.c.b16 %v175_v27, %v175_v27  ;;  %v627_v22 = vld [vmem:[%s920_s5] sm:$0xff] }
   0xb   :  { %v294_v39 = vsel %vm62_vm1, %v600_v38, 0  ;;  %113 = vmatpush.bf16.msra.mxu1 %v628_v20  ;;  %v643_v20 = vld [vmem:[%s922_s8 + $0x1] ss:$0 sm:$0xff] }
   0xc   :  { %137 = vperm.xlu2 %640, %v126_v6   ;;  %75 = vmatpush.bf16.msra.mxu0 %v66_v25  ;;  %v188_v32 = vsel %vm186_vm3, %v177_v30, 0  ;;  %v343_v30 = vld [vmem:[%s917_s2 + $0x30] sm:$0xf] }
   0xd   :  { %196 = vmatpush.bf16.msra.mxu2 %v188_v32  ;;  %v391_v31 = vunpack.c.l.b16 %v343_v30 }
   0xf   :  { %566 = vmatmul.msk.bf16.vlgmr.msra.gmra.mxu0 %vm57_vm2, %v45_v29  ;;  %114 = vmatpush.bf16.msra.mxu1 %v627_v22 }
  0x10   :  { %302 = vmatpush.bf16.msrb.mxu0 %v294_v39 }
  0x11   :  { %197 = vmatpush.bf16.msra.mxu2 %v629_v33 }
  0x12   :  { %253 = vperm.xlu1 %639, %v228_v7   ;;  %250 = vperm.xlu0 %638, %v227_v8  }
  0x14   :  { %357 = vperm.xlu2 %640, %v333_v9   ;;  %303 = vmatpush.bf16.msrb.mxu0 %v630_v40 }
  0x1a   :  { %256 = vperm.xlu1 %639, %v229_v10   ;;  %360 = vperm.xlu0 %638, %v334_v11  }
  0x1c   :  { %259 = vperm.xlu2 %640, %v230_v12  }
  0x22   :  { %366 = vperm.xlu1 %639, %v336_v13   ;;  %363 = vperm.xlu0 %638, %v335_v14  }
  0x24   :  { %238 = vperm.xlu2 %640, %v231_v15  }
  0x2a   :  { %345 = vperm.xlu1 %639, %v337_v16   ;;  %242 = vperm.xlu0 %638, %v232_v17  }
  0x2c   :  { %349 = vperm.xlu2 %640, %v338_v18   ;;  %v641_v18 = vld [vmem:[%s915_s4] ss:$0 sm:$0xff] }
  0x5e   :  { %v134_v35 = vpop.permute.xlu2 %133 }
  0x5f   :  { %vm135_vm4 = vcmp.ge.s32.totalorder %v794_v34, %v134_v35 }
  0x66   :  { %v138_v41 = vpop.permute.xlu2 %137 }
  0x67   :  { %vm139_vm5 = vcmp.lt.s32.totalorder %v794_v34, %v138_v41  ;;  %v633_v41 = vld [vmem:[%s917_s2 + $0x28] sm:$0xff] }
  0x68   :  { %vm140_vm6 = vmand %vm135_vm4, %vm139_vm5 }
  0x69   :  { %v808_v43 = vsel %vm140_vm6, 1.0, %v658_v42 }
  0x6a   :  { %v143_v40 = vpack.c.bf16 %v808_v43, %v808_v43  ;;  %v634_v43 = vld [vmem:[%s921_s7] sm:$0xff] }
  0x6b   :  { %469 = vmatpush.bf16.msrb.mxu2 %v634_v43 }
  0x6e   :  { %v358_v44 = vpop.permute.xlu2 %357 }
  0x6f   :  { %vm368_vm7 = vcmp.eq.s32.totalorder %v794_v34, %v358_v44  ;;  %v632_v44 = vld [vmem:[%s917_s2 + $0x20] sm:$0xff] }
  0x70   :  { %v811_v45 = vsel %vm368_vm7, 1.0, %v658_v42 }
  0x74   :  { %v152_v46 = vpop.permute.xlu1 %151  ;;  %v146_v47 = vpop.permute.xlu0 %145 }
  0x75   :  { %vm156_vm8 = vcmp.eq.s32.totalorder %v794_v34, %v146_v47  ;;  %vm158_vm14 = vcmp.eq.s32.totalorder %v794_v34, %v152_v46  ;;  %v642_v46 = vld [vmem:[%s919_s6] ss:$0 sm:$0xff] }
  0x76   :  { %v577_v50 = vsel %vm156_vm8, 1.0, %v658_v42  ;;  %v260_v53 = vpop.permute.xlu2 %259  ;;  %v579_v59 = vsel %vm158_vm14, 1.0, %v658_v42  ;;  %vm458_vm14 = vcmask 130048  }
  0x77   :  { %vm264_vm1 = vcmp.eq.s32.totalorder %v794_v34, %v260_v53 }
  0x78   :  { %v592_v3 = vsel %vm264_vm1, 1.0, %v658_v42  ;;  %vm556_vm1 = vcmask 7168  }
  0x7c   :  { %v155_v48 = vpop.permute.xlu1 %154  ;;  %v149_v49 = vpop.permute.xlu0 %148 }
  0x7d   :  { %vm157_vm9 = vcmp.eq.s32.totalorder %v794_v34, %v149_v49  ;;  %vm159_vm15 = vcmp.eq.s32.totalorder %v794_v34, %v155_v48 }
  0x7e   :  { %v578_v51 = vsel %vm157_vm9, 1.0, %v658_v42  ;;  %v580_v60 = vsel %vm159_vm15, 1.0, %v658_v42  ;;  %v239_v0 = vpop.permute.xlu2 %238 }
  0x7f   :  { %v168_v52 = vpack.c.bf16 %v578_v51, %v577_v50  ;;  %v169_v1 = vpack.c.bf16 %v580_v60, %v579_v59  ;;  %vm240_vm6 = vcmp.ge.s32.totalorder %v794_v34, %v239_v0 }
  0x81   :  { %585 = vmatmul.msk.bf16.vlgmr.msra.gmra.mxu2 %vm179_vm10, %v168_v52 }
  0x84   :  { %v254_v54 = vpop.permute.xlu1 %253  ;;  %v251_v55 = vpop.permute.xlu0 %250 }
  0x85   :  { %vm262_vm11 = vcmp.eq.s32.totalorder %v794_v34, %v254_v54  ;;  %vm261_vm12 = vcmp.eq.s32.totalorder %v794_v34, %v251_v55 }
  0x86   :  { %v590_v56 = vsel %vm262_vm11, 1.0, %v658_v42  ;;  %v589_v57 = vsel %vm261_vm12, 1.0, %v658_v42  ;;  %v350_v11 = vpop.permute.xlu2 %349  ;;  %vm103_vm11 = vcmask 261120   ;;  %vm404_vm12 = vcmask 1043456  }
  0x87   :  { %v273_v58 = vpack.c.bf16 %v590_v56, %v589_v57  ;;  %vm351_vm5 = vcmp.lt.s32.totalorder %v794_v34, %v350_v11 }
  0x89   :  { %601 = vmatmul.msk.bf16.vlgmr.msrb.gmra.mxu0 %vm286_vm13, %v273_v58 }
  0x8c   :  { %v257_v61 = vpop.permute.xlu1 %256  ;;  %v361_v62 = vpop.permute.xlu0 %360 }
  0x8d   :  { %vm369_vm0 = vcmp.eq.s32.totalorder %v794_v34, %v361_v62  ;;  %vm263_vm2 = vcmp.eq.s32.totalorder %v794_v34, %v257_v61  ;;  %v77_v16 = vpop.f32.mrf.mxu0 }
  0x8e   :  { %v822_v63 = vsel %vm369_vm0, 1.0, %v658_v42  ;;  %v591_v4 = vsel %vm263_vm2, 1.0, %v658_v42  ;;  %v78_v19 = vadd.f32 %v641_v18, %v77_v16  ;;  %v646_v16 = vld [vmem:[%s923_s9] ss:$0 sm:$0xff] }
  0x8f   :  { %v380_v2 = vpack.c.bf16 %v822_v63, %v811_v45  ;;  %v274_v9 = vpack.c.bf16 %v592_v3, %v591_v4 }
  0x90   :  { %v81_v21 = vmax.f32 %v78_v19, 0.0 }
  0x91   :  { %586 = vmatmul.msk.bf16.gmra.mxu2 %vm179_vm10, %v169_v1 }
  0x92   :  { %v82_v23 = vpack.c.bf16 %v81_v21, %v81_v21 }
  0x94   :  { %v367_v5 = vpop.permute.xlu1 %366  ;;  %v364_v6 = vpop.permute.xlu0 %363  ;;  %575 = vmatmul.msk.bf16.vlgmr.msra.gmra.mxu1 %vm103_vm11, %v82_v23 }
  0x95   :  { %vm371_vm3 = vcmp.eq.s32.totalorder %v794_v34, %v367_v5  ;;  %vm370_vm4 = vcmp.eq.s32.totalorder %v794_v34, %v364_v6  ;;  %v79_v17 = vpop.f32.mrf.mxu0 }
  0x96   :  { %v831_v7 = vsel %vm371_vm3, 1.0, %v658_v42  ;;  %v607_v8 = vsel %vm370_vm4, 1.0, %v658_v42 }
  0x97   :  { %v381_v10 = vpack.c.bf16 %v831_v7, %v607_v8 }
  0x99   :  { %602 = vmatmul.msk.bf16.gmra.mxu0 %vm286_vm13, %v274_v9  ;;  %vm397_vm13 = vcmask 326656  }
  0x9c   :  { %v346_v12 = vpop.permute.xlu1 %345  ;;  %v243_v13 = vpop.permute.xlu0 %242 }
  0x9d   :  { %vm347_vm7 = vcmp.ge.s32.totalorder %v794_v34, %v346_v12  ;;  %vm244_vm8 = vcmp.lt.s32.totalorder %v794_v34, %v243_v13  ;;  %v394_v34 = vpack.c.b16 %v391_v31, %v391_v31 }
  0x9e   :  { %vm352_vm9 = vmand %vm347_vm7, %vm351_vm5 }
  0x9f   :  { %v839_v14 = vsel %vm352_vm9, 1.0, %v658_v42  ;;  %vm245_vm10 = vmand %vm240_vm6, %vm244_vm8  ;;  %v406_v38 = vsel %vm404_vm12, %v394_v34, 0 }
  0xa0   :  { %v588_v15 = vsel %vm245_vm10, 1.0, %v658_v42  ;;  %v355_v3 = vpack.c.bf16 %v839_v14, %v839_v14  ;;  %v17_v14 = vstv %s925_s11 }
  0xa1   :  { %v248_v42 = vpack.c.bf16 %v588_v15, %v588_v15  ;;  %18 = vst [vmem:[#allocation2] sm:$0x1] %v17_v14  ;;  %v645_v15 = vld [vmem:[%s922_s8] ss:$0 sm:$0xff] }
 0x104   :  { %v199_v24 = vpop.f32.mrf.mxu2 }
 0x106   :  { %v305_v25 = vpop.f32.mrf.mxu0 }
 0x10c   :  { %v201_v26 = vpop.f32.mrf.mxu2 }
 0x10d   :  { %v209_v37 = vpack.c.bf16 %v201_v26, %v199_v24 }
 0x10e   :  { %v307_v27 = vpop.f32.mrf.mxu0 }
 0x10f   :  { %v315_v39 = vpack.c.bf16 %v307_v27, %v305_v25  ;;  %v644_v25 = vld [vmem:[%s922_s8 + $0x2] ss:$0 sm:$0xff]  ;;  %v647_v27 = vld [vmem:[%s922_s8 + $0x3] ss:$0 sm:$0xff] }
 0x111   :  { %v116_v47 = vpop.f32.mrf.mxu1 }
 0x112   :  { %v117_v48 = vadd.f32 %v642_v46, %v116_v47  ;;  %v651_v46 = vld [vmem:[#allocation2] ss:$0 sm:$0xff] }
 0x114   :  { %v204_v28 = vpop.f32.mrf.mxu2  ;;  %v120_v49 = vmax.f32 %v117_v48, 0.0 }
 0x116   :  { %v310_v29 = vpop.f32.mrf.mxu0  ;;  %v445_v50 = vpack.c.bf16 %v120_v49, %v120_v49 }
 0x118   :  { %624 = vmatmul.msk.bf16.vlgmr.msrb.gmra.mxu2 %vm458_vm14, %v445_v50 }
 0x119   :  { %v118_v51 = vpop.f32.mrf.mxu1 }
 0x11c   :  { %v206_v32 = vpop.f32.mrf.mxu2 }
 0x11d   :  { %v210_v33 = vpack.c.bf16 %v206_v32, %v204_v28 }
 0x11e   :  { %v312_v35 = vpop.f32.mrf.mxu0 }
 0x11f   :  { %v316_v36 = vpack.c.bf16 %v312_v35, %v310_v29  ;;  %220 = vmatpush.bf16.msra.mxu3 %v210_v33  ;;  %v649_v29 = vld [vmem:[%s922_s8 + $0x4] ss:$0 sm:$0xff]  ;;  %v648_v33 = vld [vmem:[%s922_s8 + $0x5] ss:$0 sm:$0xff] }
 0x121   :  { %326 = vmatpush.bf16.msrb.mxu1 %v316_v36 }
 0x123   :  { %221 = vmatpush.bf16.msra.mxu3 %v209_v37 }
 0x125   :  { %327 = vmatpush.bf16.msrb.mxu1 %v315_v39 }
 0x126   :  { %587 = vmatmul.msk.bf16.vlgmr.msra.gmra.mxu3 %vm103_vm11, %v143_v40 }
 0x127   :  { %413 = vmatpush.bf16.msrb.mxu3 %v406_v38 }
 0x128   :  { %603 = vmatmul.msk.bf16.vlgmr.msrb.gmra.mxu1 %vm103_vm11, %v248_v42 }
 0x12b   :  { %414 = vmatpush.bf16.msrb.mxu3 %v633_v41  ;;  %v650_v41 = vld [vmem:[%s924_s10] ss:$0 sm:$0xff] }
 0x12f   :  { %415 = vmatpush.bf16.msrb.mxu3 %v632_v44 }
 0x136   :  { %617 = vmatmul.msk.bf16.vlgmr.msrb.gmra.mxu3 %vm397_vm13, %v380_v2 }
 0x146   :  { %618 = vmatmul.msk.bf16.gmra.mxu3 %vm397_vm13, %v381_v10 }
 0x19b   :  { %v471_v4 = vpop.f32.mrf.mxu2 }
 0x19c   :  { %v472_v19 = vadd.f32 %v646_v16, %v471_v4 }
 0x1a3   :  { %v473_v5 = vpop.f32.mrf.mxu2 }
 0x1a5   :  { %v329_v45 = vpop.f32.mrf.mxu1 }
 0x1a6   :  { %v483_v52 = vmul.f32 %v329_v45, %v120_v49 }
 0x1a8   :  { %v484_v53 = vsel %vm458_vm14, %v483_v52, 0.0 }
 0x1a9   :  { %v223_v54 = vpop.f32.mrf.mxu3  ;;  %485 = vadd.xlane.f32.xlu1 %v484_v53 }
 0x1aa   :  { %v491_v55 = vmul.f32 %v329_v45, %v223_v54  ;;  %v475_v56 = vmul.f32 %v223_v54, %v120_v49 }
 0x1ac   :  { %v492_v57 = vsel %vm458_vm14, %v491_v55, 0.0  ;;  %v476_v58 = vsel %vm458_vm14, %v475_v56, 0.0 }
 0x1ad   :  { %493 = vadd.xlane.f32.xlu2 %v492_v57  ;;  %v331_v59 = vpop.f32.mrf.mxu1  ;;  %477 = vadd.xlane.f32.xlu0 %v476_v58 }
 0x1b1   :  { %v225_v60 = vpop.f32.mrf.mxu3 }
 0x1b9   :  { %v417_v61 = vpop.f32.mrf.mxu3 }
 0x1c1   :  { %v419_v62 = vpop.f32.mrf.mxu3 }
 0x1c2   :  { %v427_v2 = vpack.c.bf16 %v419_v62, %v417_v61 }
 0x1c9   :  { %v422_v63 = vpop.f32.mrf.mxu3 }
 0x1d1   :  { %v424_v0 = vpop.f32.mrf.mxu3 }
 0x1d2   :  { %v428_v1 = vpack.c.bf16 %v424_v0, %v422_v63 }
 0x1d4   :  { %438 = vmatpush.bf16.msra.mxu1 %v428_v1 }
 0x1d8   :  { %439 = vmatpush.bf16.msra.mxu1 %v427_v2 }
 0x1db   :  { %619 = vmatmul.msk.bf16.vlgmr.msra.gmra.mxu1 %vm103_vm11, %v355_v3 }
 0x21c   :  { %v486_v21 = vpop.xlane.xlu1 %485 }
 0x21d   :  { %v489_v24 = vmul.f32 %v643_v20, %v486_v21 }
 0x220   :  { %v478_v17 = vpop.xlane.xlu0 %477  ;;  %v494_v22 = vpop.xlane.xlu2 %493 }
 0x221   :  { %v481_v18 = vmul.f32 %v645_v15, %v478_v17  ;;  %v497_v28 = vmul.f32 %v644_v25, %v494_v22 }
 0x223   :  { %v482_v23 = vadd.f32 %v481_v18, %v472_v19 }
 0x225   :  { %v490_v26 = vadd.f32 %v489_v24, %v482_v23 }
 0x227   :  { %v498_v31 = vadd.f32 %v497_v28, %v490_v26 }
 0x258   :  { %v441_v6 = vpop.f32.mrf.mxu1 }
 0x259   :  { %v499_v7 = vmul.f32 %v441_v6, %v120_v49  ;;  %v515_v8 = vmul.f32 %v441_v6, %v329_v45  ;;  %v507_v9 = vmul.f32 %v441_v6, %v223_v54 }
 0x25b   :  { %v500_v10 = vsel %vm458_vm14, %v499_v7, 0.0  ;;  %v516_v11 = vsel %vm458_vm14, %v515_v8, 0.0  ;;  %v508_v12 = vsel %vm458_vm14, %v507_v9, 0.0 }
 0x25c   :  { %501 = vadd.xlane.f32.xlu2 %v500_v10  ;;  %517 = vadd.xlane.f32.xlu1 %v516_v11 }
 0x25d   :  { %509 = vadd.xlane.f32.xlu0 %v508_v12 }
 0x260   :  { %v443_v13 = vpop.f32.mrf.mxu1 }
 0x2cf   :  { %v502_v30 = vpop.xlane.xlu2 %501  ;;  %v518_v35 = vpop.xlane.xlu1 %517 }
 0x2d0   :  { %v505_v32 = vmul.f32 %v647_v27, %v502_v30  ;;  %v510_v34 = vpop.xlane.xlu0 %509  ;;  %v521_v38 = vmul.f32 %v648_v33, %v518_v35 }
 0x2d1   :  { %v513_v37 = vmul.f32 %v649_v29, %v510_v34 }
 0x2d2   :  { %v506_v36 = vadd.f32 %v505_v32, %v498_v31 }
 0x2d4   :  { %v514_v39 = vadd.f32 %v513_v37, %v506_v36 }
 0x2d6   :  { %v522_v40 = vadd.f32 %v521_v38, %v514_v39 }
 0x2d8   :  { %v523_v42 = vmax.f32 %v522_v40, 0.0 }
 0x2da   :  { %v528_v44 = vmul.f32 %v650_v41, %v523_v42 }
 0x2dc   :  { %v529_v43 = vsel %vm103_vm11, %v528_v44, 0.0 }
 0x2dd   :  { %530 = vadd.xlane.f32.xlu2 %v529_v43 }
 0x350   :  { %v531_v47 = vpop.xlane.xlu2 %530 }
 0x351   :  { %v536_v48 = vadd.f32 %v651_v46, %v531_v47 }
 0x353   :  { %v625_v49 = vmul.f32 -1.442695, %v536_v48 }
 0x355   :  { %652 = vpow2.f32 %v625_v49 }
 0x35b   :  { %v653_v50 = vpop.eup %652 }
 0x35c   :  { %v540_v51 = vadd.f32 1.0, %v653_v50 }
 0x35e   :  { %654 = vrcp.f32 %v540_v51  ;;  %v552_v54 = vand.u32 2147483648, %v540_v51  ;;  %v550_v56 = vand.u32 2147483647, %v540_v51  ;;  %vm546_vm0 = vweird.f32 %v540_v51 }
 0x360   :  { %v553_v58 = vor.u32 1.1754944e-38, %v552_v54  ;;  %vm551_vm3 = vcmp.eq.f32.partialorder %v550_v56, 8.507059e+37 }
 0x364   :  { %v655_v45 = vpop.eup %654 }
 0x365   :  { %v542_v52 = vmul.f32 %v655_v45, %v540_v51  ;;  %vm547_vm15 = vweird.f32 %v655_v45 }
 0x366   :  { %vm548_vm2 = vmor %vm546_vm0, %vm547_vm15 }
 0x367   :  { %v543_v53 = vsub.f32 1.0, %v542_v52 }
 0x369   :  { %v544_v55 = vmul.f32 %v655_v45, %v543_v53 }
 0x36b   :  { %v545_v57 = vadd.f32 %v655_v45, %v544_v55 }
 0x36d   :  { %v549_v59 = vsel %vm548_vm2, %v655_v45, %v545_v57 }
 0x36e   :  { %v554_v60 = vsel %vm551_vm3, %v553_v58, %v549_v59 }
 0x36f   :  { %557 = vst.msk [vmem:[%s926_s12] sm:$0xff] %vm556_vm1, %v554_v60 }

</bundles_post_ra>
